<compile_context>
chip_gen: v6e
topology: v6e:2x2x1
jax: 0.10.0
libtpu: 0.0.40
codegen_flags: <defaults>
</compile_context>

<pallas_src>
import functools

import jax
import jax.numpy as jnp
from jax import lax
from jax.experimental import pallas as pl
from jax.experimental.pallas import tpu as pltpu

_LANE = 128  # lane-pad target; bump to 256 for v6e/v7x tiles at production sizes.


def _round_up(n, m):
    return ((n + m - 1) // m) * m


def _lstm_head_kernel(x_ref, w1_ref, b1_ref, w2_ref, b2_ref, o_ref, *, softmax: bool):
    # hidden = relu(x @ W1 + b1); W1 already [in_p, hid_p] (pre-transposed, bf16),
    # x already lane-padded + bf16.  f32 MXU accumulation, f32 epilogue.
    h = lax.dot_general(
        x_ref[...], w1_ref[...],
        dimension_numbers=(((1,), (0,)), ((), ())),
        preferred_element_type=jnp.float32,
    )
    h = jnp.maximum(h + b1_ref[...], 0.0)

    # out = h @ W2 + b2; cast hidden back to bf16 so the second matmul is also
    # bf16-native on the MXU.  W2/b2 already carry the 1/temperature fold when
    # softmax is enabled and are lane-padded so the store below is lane-dense.
    out = lax.dot_general(
        h.astype(w2_ref.dtype), w2_ref[...],
        dimension_numbers=(((1,), (0,)), ((), ())),
        preferred_element_type=jnp.float32,
    )
    out = out + b2_ref[...]

    if softmax:
        # PyTorch: F.softmax(out / T, dim=0) — softmax over the batch (sublane) axis.
        # 1/T is pre-folded into W2/b2.  Padded output columns are all-zero logits
        # (uniform 1/B after softmax) and are sliced away in the wrapper.
        out = out - jnp.max(out, axis=0, keepdims=True)
        e = jnp.exp(out)
        # Exact reciprocal: outputs are probabilities; cost delta is unmeasurable here.
        out = e * pl.reciprocal(jnp.sum(e, axis=0, keepdims=True), approx=False)

    o_ref[...] = out.astype(o_ref.dtype)


def prepare_lstm_head_params(w1, b1, w2, b2, *, softmax=False, temperature=1.0,
                             lane_pad=_LANE, compute_dtype=jnp.bfloat16):
    """One-time parameter preparation (amortized; do at parameter-creation time).

    Inputs use nn.Linear layout: w1 [hidden, in], b1 [hidden], w2 [out, hidden], b2 [out].
    Returns (w1_t, b1_row, w2_t, b2_row) where:
      - w1_t [in_p, hid_p], w2_t [hid_p, out_p]: pre-transposed, zero lane-padded,
        cast to `compute_dtype` (bf16) for MXU-native matmuls,
      - 1/temperature folded into w2/b2 when softmax is enabled (folded params are
        therefore softmax-specific and must not be reused for a raw-logits path),
      - biases kept in f32 (epilogue math stays f32).
    """
    hidden_size, in_size = w1.shape
    out_size = w2.shape[0]
    in_p = _round_up(in_size, lane_pad)
    hid_p = _round_up(hidden_size, lane_pad)
    out_p = _round_up(out_size, lane_pad)

    w1 = jnp.asarray(w1, jnp.float32)
    b1 = jnp.asarray(b1, jnp.float32)
    w2 = jnp.asarray(w2, jnp.float32)
    b2 = jnp.asarray(b2, jnp.float32)

    if softmax:
        inv_t = 1.0 / float(temperature)
        w2 = w2 * inv_t
        b2 = b2 * inv_t

    w1_t = jnp.pad(w1.T, ((0, in_p - in_size), (0, hid_p - hidden_size))).astype(compute_dtype)
    w2_t = jnp.pad(w2.T, ((0, hid_p - hidden_size), (0, out_p - out_size))).astype(compute_dtype)
    b1_row = jnp.pad(b1, (0, hid_p - hidden_size)).reshape(1, hid_p)
    b2_row = jnp.pad(b2, (0, out_p - out_size)).reshape(1, out_p)
    return w1_t, b1_row, w2_t, b2_row


@functools.partial(jax.jit, static_argnames=("out_size", "softmax"))
def lstm_head_forward(x, params, *, out_size, softmax=False):
    """x: [B, in_size] (f32); params from prepare_lstm_head_params."""
    w1_t, b1_row, w2_t, b2_row = params
    B, in_size = x.shape
    in_p, hid_p = w1_t.shape
    out_p = w2_t.shape[1]

    # Zero-pad x to the lane-padded input width and cast to the compute dtype.
    # This runs inside the same jit, so it fuses with the pallas_call dispatch.
    x_p = jnp.pad(x.astype(w1_t.dtype), ((0, 0), (0, in_p - in_size)))

    kernel = functools.partial(_lstm_head_kernel, softmax=softmax)

    flops = 2 * B * (in_p * hid_p + hid_p * out_p)
    transcendentals = B * out_p if softmax else 0
    bytes_accessed = (x_p.size * x_p.dtype.itemsize
                      + w1_t.size * w1_t.dtype.itemsize
                      + w2_t.size * w2_t.dtype.itemsize
                      + 4 * (b1_row.size + b2_row.size + B * out_p))

    vmem = pl.BlockSpec(memory_space=pltpu.MemorySpace.VMEM)
    out_padded = pl.pallas_call(
        kernel,
        out_shape=jax.ShapeDtypeStruct((B, out_p), jnp.float32),
        in_specs=[vmem, vmem, vmem, vmem, vmem],
        out_specs=vmem,
        cost_estimate=pl.CostEstimate(
            flops=flops, transcendentals=transcendentals, bytes_accessed=bytes_accessed),
    )(x_p, w1_t, b1_row, w2_t, b2_row)

    # Slice fuses inside this jit.  Ideally the consumer accepts the padded slab
    # directly (columns >= out_size must then be masked/ignored by the consumer).
    return out_padded[:, :out_size]


def _init_linear(key, fan_out, fan_in, dtype=jnp.float32):
    # Deterministic init mirroring nn.Linear's uniform(-1/sqrt(fan_in), 1/sqrt(fan_in)).
    kw, kb = jax.random.split(key)
    bound = 1.0 / jnp.sqrt(jnp.asarray(fan_in, dtype))
    w = jax.random.uniform(kw, (fan_out, fan_in), dtype, -bound, bound)
    b = jax.random.uniform(kb, (fan_out,), dtype, -bound, bound)
    return w, b


def _bf16(a):
    return a.astype(jnp.bfloat16).astype(jnp.float32)


if __name__ == "__main__":
    key = jax.random.PRNGKey(0)
    k_x, k_l1, k_l2 = jax.random.split(key, 3)

    # Small shapes consistent with the module: batch=8, in_size=32, hidden=40, out=16.
    B, in_size, hidden_size, out_size = 8, 32, 40, 16
    temperature = 2.0

    x = jax.random.normal(k_x, (B, in_size), jnp.float32)
    w1, b1 = _init_linear(k_l1, hidden_size, in_size)   # linear:    in -> hidden
    w2, b2 = _init_linear(k_l2, out_size, hidden_size)  # out_layer: hidden -> out

    # --- softmax=False branch ---
    params = prepare_lstm_head_params(w1, b1, w2, b2, softmax=False)
    out = lstm_head_forward(x, params, out_size=out_size, softmax=False)
    out = jax.block_until_ready(out)
    assert out.shape == (B, out_size)

    # Reference mirroring the kernel's bf16 weight/activation quantization
    # (products are exact in the f32 accumulator, so this matches tightly).
    h_ref = jnp.maximum(_bf16(x) @ _bf16(w1).T + b1, 0.0)
    ref = _bf16(h_ref) @ _bf16(w2).T + b2
    assert jnp.allclose(out, ref, atol=1e-4, rtol=1e-4)

    # Loose sanity check against the pure-f32 module semantics.
    ref_f32 = jnp.maximum(x @ w1.T + b1, 0.0) @ w2.T + b2
    assert jnp.allclose(out, ref_f32, atol=1e-1, rtol=1e-1)

    # --- softmax=True branch (softmax over dim=0, the batch axis; T=2) ---
    params_sm = prepare_lstm_head_params(
        w1, b1, w2, b2, softmax=True, temperature=temperature)
    out_sm = lstm_head_forward(x, params_sm, out_size=out_size, softmax=True)
    out_sm = jax.block_until_ready(out_sm)
    assert out_sm.shape == (B, out_size)

    # Mirror the 1/T fold (done in f32 before the bf16 cast) in the reference.
    logits_ref = _bf16(h_ref) @ _bf16(w2 / temperature).T + (b2 / temperature)
    ref_sm = jax.nn.softmax(logits_ref, axis=0)
    assert jnp.allclose(out_sm, ref_sm, atol=1e-4, rtol=1e-4)
    # Columns of a softmax over dim=0 should sum to ~1 (exact reciprocal used).
    assert jnp.allclose(jnp.sum(out_sm, axis=0), jnp.ones((out_size,)), atol=1e-4)

    print("KERNEL_OK")
</pallas_src>

<mosaic_0001>
module attributes {stable_mosaic.version = 11 : i64} {
  func.func @_lstm_head_kernel(%arg0: memref<8x128xbf16, #tpu.memory_space<vmem>>, %arg1: memref<128x128xbf16, #tpu.memory_space<vmem>>, %arg2: memref<1x128xf32, #tpu.memory_space<vmem>>, %arg3: memref<128x128xbf16, #tpu.memory_space<vmem>>, %arg4: memref<1x128xf32, #tpu.memory_space<vmem>>, %arg5: memref<8x128xf32, #tpu.memory_space<vmem>>) attributes {dimension_semantics = [], scalar_prefetch = 0 : i64, scratch_operands = 0 : i64, tpu.core_type = #tpu.core_type<tc>} {
    %c0 = arith.constant 0 : index
    %c0_0 = arith.constant 0 : index
    %0 = vector.load %arg0[%c0, %c0_0] : memref<8x128xbf16, #tpu.memory_space<vmem>>, vector<8x128xbf16>
    %c0_1 = arith.constant 0 : index
    %c0_2 = arith.constant 0 : index
    %1 = vector.load %arg1[%c0_1, %c0_2] : memref<128x128xbf16, #tpu.memory_space<vmem>>, vector<128x128xbf16>
    %cst = arith.constant dense<0.000000e+00> : vector<8x128xf32>
    %2 = tpu.matmul %0, %1, %cst {dimension_numbers = #tpu.dot_dimension_numbers<[1], [0], [0], [1], [0, 0, 1, 1], [], []>} : vector<8x128xbf16>, vector<128x128xbf16>, vector<8x128xf32> -> vector<8x128xf32>
    %c0_3 = arith.constant 0 : index
    %c0_4 = arith.constant 0 : index
    %3 = vector.load %arg2[%c0_3, %c0_4] : memref<1x128xf32, #tpu.memory_space<vmem>>, vector<1x128xf32>
    %4 = vector.broadcast %3 : vector<1x128xf32> to vector<8x128xf32>
    %5 = arith.addf %2, %4 : vector<8x128xf32>
    %cst_5 = arith.constant 0.000000e+00 : f32
    %6 = vector.broadcast %cst_5 : f32 to vector<8x128xf32>
    %7 = arith.maximumf %5, %6 : vector<8x128xf32>
    %8 = arith.truncf %7 : vector<8x128xf32> to vector<8x128xbf16>
    %c0_6 = arith.constant 0 : index
    %c0_7 = arith.constant 0 : index
    %9 = vector.load %arg3[%c0_6, %c0_7] : memref<128x128xbf16, #tpu.memory_space<vmem>>, vector<128x128xbf16>
    %cst_8 = arith.constant dense<0.000000e+00> : vector<8x128xf32>
    %10 = tpu.matmul %8, %9, %cst_8 {dimension_numbers = #tpu.dot_dimension_numbers<[1], [0], [0], [1], [0, 0, 1, 1], [], []>} : vector<8x128xbf16>, vector<128x128xbf16>, vector<8x128xf32> -> vector<8x128xf32>
    %c0_9 = arith.constant 0 : index
    %c0_10 = arith.constant 0 : index
    %11 = vector.load %arg4[%c0_9, %c0_10] : memref<1x128xf32, #tpu.memory_space<vmem>>, vector<1x128xf32>
    %12 = vector.broadcast %11 : vector<1x128xf32> to vector<8x128xf32>
    %13 = arith.addf %10, %12 : vector<8x128xf32>
    %c0_11 = arith.constant 0 : index
    %c0_12 = arith.constant 0 : index
    %14 = vector.load %arg5[%c0_11, %c0_12] : memref<8x128xf32, #tpu.memory_space<vmem>>, vector<8x128xf32>
    tpu.vector_store %arg5[%c0_11, %c0_12], %13 {strides = array<i32>} : memref<8x128xf32, #tpu.memory_space<vmem>>, vector<8x128xf32>,
    return
  }
}

</mosaic_0001>

<bundles_post_ra>
// kernel: lstm_head_forward.1
= control target key start
LH: loop header
LB: loop body
LE: loop exit
PB: predicated region body
PF: predicated region fallthrough
CT: control target
= control target key end

     0   :  { %10 = vsyncpa [#allocation3], 0  ;;  %s512_s0 = inlined_call_operand.vmem [shape: bf16[8,128], index: 0, kind: input, shape index: {}]   ;;  %s513_s1 = inlined_call_operand.hbm [shape: bf16[128,128], index: 1, kind: input, shape index: {}]   ;;  %s514_s2 = inlined_call_operand.vmem [shape: f32[1,128], index: 2, kind: input, shape index: {}]   ;;  %s515_s3 = inlined_call_operand.hbm [shape: bf16[128,128], index: 3, kind: input, shape index: {}]   ;;  %s516_s4 = inlined_call_operand.vmem [shape: f32[1,128], index: 4, kind: input, shape index: {}]   ;;  %s517_s5 = inlined_call_operand.hbm [shape: f32[8,128], index: 5, kind: output, shape index: {}]  }
   0x1   :  { %11 = vsyncpa [#allocation6], 0 }
   0x2   :  { %12 = vsyncpa [#allocation4], 0  ;;  %s457_s18 = smov [#allocation2]  }
   0x3   :  { %s20_s19 = sshll.u32 %s457_s18, 4  ;;  %s21_s19 = int_to_ptr.vmem [resolvable:$true] %s20_s19 }
   0x4   :  { %s399_s20 = scalar_lea.vmem %s21_s19, 1024  ;;  %p404_p1 = scmp.lt.s32.totalorder %s21_s19, %s21_s19 }
   0x5   :  { %p400_p0 = scmp.ne.s32.totalorder %s21_s19, %s399_s20  ;;  %p405_p2 = scmp.lt.s32.totalorder %s399_s20, %s399_s20 }
   0x7   :  { %p406_p3 = por %p405_p2, %p404_p1 }
   0x9   :  { %p407_p4 = pnand %p406_p3, %p400_p0 }
   0xb   :  { %410 = shalt.err (!%p407_p4)
}
   0xc   :  { %s458_s21 = smov 64   ;;  %s459_s22 = smov 4  }
   0xd   :  { %26 = dma.hbm_to_vmem [thread:$0]  %s513_s1, 1024, %s21_s19, [#allocation3], %s458_s21, %s458_s21, %s459_s22  }
   0xe   :  { %s460_s25 = smov [#allocation5]  }
   0xf   :  { %s34_s26 = sshll.u32 %s460_s25, 4  ;;  %s35_s26 = int_to_ptr.vmem [resolvable:$true] %s34_s26 }
  0x10   :  { %s419_s27 = scalar_lea.vmem %s35_s26, 1024  ;;  %p424_p6 = scmp.lt.s32.totalorder %s35_s26, %s35_s26 }
  0x11   :  { %p420_p5 = scmp.ne.s32.totalorder %s35_s26, %s419_s27  ;;  %p425_p7 = scmp.lt.s32.totalorder %s419_s27, %s419_s27 }
  0x13   :  { %p426_p8 = por %p425_p7, %p424_p6 }
  0x15   :  { %p427_p9 = pnand %p426_p8, %p420_p5 }
  0x17   :  { %430 = shalt.err (!%p427_p9)
}
  0x18   :  { %40 = dma.hbm_to_vmem [thread:$0]  %s515_s3, 1024, %s35_s26, [#allocation6], %s458_s21, %s458_s21, %s459_s22  }
  0x19   :  { %451 = dma.done.wait [#allocation3], 1024  }
  0x1a   :  { %452 = vsyncadd [#allocation3], 4294966272 }
  0x1b   :  { %453 = dma.done.wait [#allocation6], 1024  }
  0x1c   :  { %454 = vsyncadd [#allocation6], 4294966272  ;;  %v461_v0 = vmov 0.0   ;;  %vm462_vm0 = vmmov 0   ;;  %v375_v1 = vld [vmem:[#allocation2 + $0x38] sm:$0xff]   ;;  %v376_v2 = vld [vmem:[#allocation2 + $0x30] sm:$0xff]  }
  0x1d   :  { %328 = vmatprep.subr.bf16.mxu0 %v461_v0  ;;  %344 = vmatprep.mubr.msk.bf16.mxu0 %vm462_vm0, %v461_v0  ;;  %v377_v3 = vld [vmem:[#allocation2 + $0x28] sm:$0xff]   ;;  %v383_v4 = vld [vmem:[#allocation5 + $0x38] sm:$0xff]   ;;  %v378_v5 = vld [vmem:[#allocation2 + $0x20] sm:$0xff]   ;;  %s463_s8 = smov [#allocation7]  }
  0x1e   :  { %348 = vmatprep.subr.bf16.mxu1 %v461_v0  ;;  %364 = vmatprep.mubr.msk.bf16.mxu1 %vm462_vm0, %v461_v0  ;;  %v384_v6 = vld [vmem:[#allocation5 + $0x30] sm:$0xff]   ;;  %v379_v7 = vld [vmem:[#allocation2 + $0x18] sm:$0xff]   ;;  %v385_v8 = vld [vmem:[#allocation5 + $0x28] sm:$0xff]   ;;  %s282_s9 = sshll.u32 %s463_s8, 4  ;;  %s283_s9 = int_to_ptr.vmem [resolvable:$true] %s282_s9 }
  0x1f   :  { %329 = vmatpush3.bf16.msra.mxu0 %v375_v1  ;;  %349 = vmatpush3.bf16.msra.mxu1 %v383_v4  ;;  %v380_v9 = vld [vmem:[#allocation2 + $0x10] sm:$0xff]   ;;  %v386_v10 = vld [vmem:[#allocation5 + $0x20] sm:$0xff]   ;;  %v381_v11 = vld [vmem:[#allocation2 + $0x8] sm:$0xff]   ;;  %p436_p11 = scmp.lt.s32.totalorder %s283_s9, %s283_s9 }
  0x20   :  { %330 = vmatprep.subr.bf16.mxu0 %v461_v0  ;;  %350 = vmatprep.subr.bf16.mxu1 %v461_v0  ;;  %v387_v12 = vld [vmem:[#allocation5 + $0x18] sm:$0xff]   ;;  %v382_v13 = vld [vmem:[#allocation2] sm:$0xff]   ;;  %v388_v14 = vld [vmem:[#allocation5 + $0x10] sm:$0xff]  }
  0x21   :  { %v50_v15 = vld [vmem:[%s512_s0] sm:$0xf]  ;;  %v389_v16 = vld [vmem:[#allocation5 + $0x8] sm:$0xff]  }
  0x22   :  { %v390_v17 = vld [vmem:[#allocation5] sm:$0xff]  }
  0x23   :  { %331 = vmatpush3.bf16.msra.mxu0 %v376_v2  ;;  %351 = vmatpush3.bf16.msra.mxu1 %v384_v6  ;;  %v292_v18 = vld [vmem:[%s514_s2] ss:$0 sm:$0xff]  ;;  %s431_s2 = scalar_lea.vmem %s283_s9, 128 }
  0x24   :  { %332 = vmatprep.subr.bf16.mxu0 %v461_v0  ;;  %352 = vmatprep.subr.bf16.mxu1 %v461_v0  ;;  %v301_v26 = vld [vmem:[%s516_s4] ss:$0 sm:$0xff]  ;;  %p432_p10 = scmp.ne.s32.totalorder %s283_s9, %s431_s2  ;;  %p437_p12 = scmp.lt.s32.totalorder %s431_s2, %s431_s2 }
  0x26   :  { %p438_p13 = por %p437_p12, %p436_p11 }
  0x27   :  { %333 = vmatpush3.bf16.msra.mxu0 %v377_v3  ;;  %353 = vmatpush3.bf16.msra.mxu1 %v385_v8 }
  0x28   :  { %334 = vmatprep.subr.bf16.mxu0 %v461_v0  ;;  %354 = vmatprep.subr.bf16.mxu1 %v461_v0  ;;  %p439_p0 = pnand %p438_p13, %p432_p10 }
  0x2b   :  { %335 = vmatpush3.bf16.msra.mxu0 %v378_v5  ;;  %355 = vmatpush3.bf16.msra.mxu1 %v386_v10 }
  0x2c   :  { %336 = vmatprep.subr.bf16.mxu0 %v461_v0  ;;  %356 = vmatprep.subr.bf16.mxu1 %v461_v0 }
  0x2f   :  { %337 = vmatpush3.bf16.msra.mxu0 %v379_v7  ;;  %357 = vmatpush3.bf16.msra.mxu1 %v387_v12 }
  0x30   :  { %338 = vmatprep.subr.bf16.mxu0 %v461_v0  ;;  %358 = vmatprep.subr.bf16.mxu1 %v461_v0 }
  0x33   :  { %339 = vmatpush3.bf16.msra.mxu0 %v380_v9  ;;  %359 = vmatpush3.bf16.msra.mxu1 %v388_v14 }
  0x34   :  { %340 = vmatprep.subr.bf16.mxu0 %v461_v0  ;;  %360 = vmatprep.subr.bf16.mxu1 %v461_v0 }
  0x37   :  { %341 = vmatpush3.bf16.msra.mxu0 %v381_v11  ;;  %361 = vmatpush3.bf16.msra.mxu1 %v389_v16 }
  0x38   :  { %342 = vmatprep.subr.bf16.mxu0 %v461_v0  ;;  %362 = vmatprep.subr.bf16.mxu1 %v461_v0 }
  0x3b   :  { %343 = vmatpush3.bf16.msra.mxu0 %v382_v13  ;;  %363 = vmatpush3.bf16.msra.mxu1 %v390_v17 }
  0x3e   :  { %345 = vmatmul.mubr.bf16.vlgmr.msra.gmra.mxu0 %v50_v15 }
  0xfe   :  { %v156_v19 = vpop.f32.mrf.mxu0 }
  0xff   :  { %v157_v20 = vadd.f32 %v292_v18, %v156_v19 }
 0x100   :  { %v346_v21 = vpop.f32.mrf.mxu0 }
 0x101   :  { %v162_v22 = vmax.f32 %v157_v20, 0.0 }
 0x102   :  { %v159_v23 = vpop.f32.mrf.mxu0 }
 0x103   :  { %v163_v24 = vpack.c.bf16 %v162_v22, %v162_v22 }
 0x104   :  { %v347_v25 = vpop.f32.mrf.mxu0 }
 0x105   :  { %365 = vmatmul.mubr.bf16.vlgmr.msra.gmra.mxu1 %v163_v24 }
 0x1c5   :  { %v269_v27 = vpop.f32.mrf.mxu1 }
 0x1c6   :  { %v270_v28 = vadd.f32 %v301_v26, %v269_v27 }
 0x1c7   :  { %v366_v29 = vpop.f32.mrf.mxu1 }
 0x1c8   :  { %275 = vst [vmem:[#allocation7] sm:$0xff] %v270_v28 }
 0x1c9   :  { %v272_v30 = vpop.f32.mrf.mxu1 }
 0x1ca   :  { %442 = shalt.err (!%p439_p0)
}
 0x1cb   :  { %285 = dma.vmem_to_hbm [thread:$0]  %s283_s9, 128, %s517_s5, [#allocation4]   ;;  %v367_v31 = vpop.f32.mrf.mxu1 }
 0x1cc   :  { %455 = dma.done.wait [#allocation4], 128  }
 0x1cd   :  { %456 = vsyncadd [#allocation4], 4294967168 }
 0x1ce   :  { %289 = vsyncpa [#allocation3], 1 }
 0x1cf   :  { %290 = vsyncpa [#allocation6], 1 }
 0x1d0   :  { %291 = vsyncpa [#allocation4], 1 }

</bundles_post_ra>
